<compile_context>
chip_gen: v7x
topology: tpu7x:2x2x1
jax: 0.10.0
libtpu: 0.0.40
codegen_flags: <defaults>
</compile_context>

<pallas_src>
import functools

import jax
import jax.numpy as jnp
from jax import lax
from jax.experimental import pallas as pl
from jax.experimental.pallas import tpu as pltpu


def cnn_kernel(x_ref, wconv_ref, bconv_ref, wfc_ref, bfc_ref, out_ref,
               *, feat_dim, kernel_size, pool_size, l_pool):
    """One grid step = TB batch elements (batch on the lane axis).

    x_ref:     (T_pad*F, TB)       time-padded, (time,feature)-flattened input
    wconv_ref: (C_out, K*F)
    bconv_ref: (C_out, 1)
    wfc_ref:   (1, L_pool*C_out)
    bfc_ref:   (1, 1)  resident in SMEM
    out_ref:   (1, TB)             lane-dense logits/probabilities row
    """
    tb = out_ref.shape[-1]
    wc = wconv_ref[...]                                   # (C_out, K*F)
    c_out = wc.shape[0]
    kf = kernel_size * feat_dim
    # Hoisted bias broadcast (JAX does not CSE broadcast_in_dim inside the loop).
    bias = jnp.broadcast_to(bconv_ref[...], (c_out, tb))  # (C_out, TB)

    def conv_relu(pos):
        # In-kernel im2col: a K*F-tall contiguous window of the flattened
        # (time, feature) axis == the receptive field of conv position `pos`.
        xs = x_ref[pl.ds(pos * feat_dim, kf), :]          # (K*F, TB)
        y = jnp.dot(wc, xs, preferred_element_type=jnp.float32)   # (C_out, TB)
        return jnp.maximum(y + bias, 0.0)

    # Conv1d + ReLU + MaxPool1d: elementwise max over the pool_size conv positions
    # feeding each pooled output position — all vectorized over the TB batch lanes.
    pooled = []
    for j in range(l_pool):
        pj = conv_relu(j * pool_size)
        for p in range(1, pool_size):
            pj = jnp.maximum(pj, conv_relu(j * pool_size + p))
        pooled.append(pj)
    feat = jnp.concatenate(pooled, axis=0)                # (L_pool*C_out, TB)

    # TODO(synk): Dropout is identity at inference / p=0.0 -> no-op here.

    # Linear(feature_dim, 1) + Sigmoid for the whole batch tile in one matmul.
    logits = jnp.dot(wfc_ref[...], feat, preferred_element_type=jnp.float32)  # (1, TB)
    logits = logits + bfc_ref[0, 0]
    out_ref[...] = 1.0 / (1.0 + jnp.exp(-logits))         # Sigmoid


def cnn_forward(x, w_conv, b_conv, w_fc, b_fc, *, kernel_size, pool_size, block_b=256):
    B, T, F = x.shape
    C_out = w_conv.shape[0]
    K = kernel_size
    pad = 1
    L_out = (T - K + 2 * pad) // 1 + 1
    L_pool = L_out // pool_size
    KF = K * F
    T_pad = T + 2 * pad

    assert block_b % 128 == 0, "batch tile must be lane-aligned (multiple of 128)"
    TB = block_b
    B_pad = ((B + TB - 1) // TB) * TB
    num_tiles = B_pad // TB

    # --- glue: pad time (Conv1d padding=1) and batch, flatten (time, feature),
    #     put batch on the last (lane) axis.  No im2col expansion in HBM. ---
    x_p = jnp.pad(x.astype(jnp.float32), ((0, B_pad - B), (pad, pad), (0, 0)))
    xT = x_p.reshape(B_pad, T_pad * F).T                   # (T_pad*F, B_pad)

    # --- glue: weight re-layouts ---
    w_mat = jnp.transpose(w_conv, (0, 2, 1)).reshape(C_out, KF)   # [c, k*C_in + i]
    b_conv_col = b_conv.reshape(C_out, 1)
    # torch .view(B, -1) flatten is channel-major: feature i = c*L_pool + j
    w_fc_row = w_fc.reshape(C_out, L_pool).T.reshape(1, L_pool * C_out)
    b_fc_2d = b_fc.reshape(1, 1).astype(jnp.float32)

    kern = functools.partial(cnn_kernel, feat_dim=F, kernel_size=K,
                             pool_size=pool_size, l_pool=L_pool)
    out = pl.pallas_call(
        kern,
        out_shape=jax.ShapeDtypeStruct((1, B_pad), jnp.float32),
        grid_spec=pltpu.PrefetchScalarGridSpec(
            num_scalar_prefetch=0,
            grid=(num_tiles,),
            in_specs=[
                pl.BlockSpec((T_pad * F, TB), lambda t: (0, t)),      # batch-tiled x^T
                pl.BlockSpec((C_out, KF), lambda t: (0, 0)),          # resident weights
                pl.BlockSpec((C_out, 1), lambda t: (0, 0)),
                pl.BlockSpec((1, L_pool * C_out), lambda t: (0, 0)),
                pl.BlockSpec(memory_space=pltpu.MemorySpace.SMEM),    # fc bias scalar
            ],
            out_specs=pl.BlockSpec((1, TB), lambda t: (0, t)),
        ),
        compiler_params=pltpu.CompilerParams(dimension_semantics=("parallel",)),
    )(xT, w_mat, b_conv_col, w_fc_row, b_fc_2d)
    return out[0, :B].reshape(B, 1)


def reference_forward(x, w_conv, b_conv, w_fc, b_fc, *, kernel_size, pool_size):
    """Pure-JAX reference mirroring the PyTorch forward."""
    B, T, F = x.shape
    C_out = w_conv.shape[0]
    xp = jnp.transpose(x, (0, 2, 1))                       # x.permute(0, 2, 1)
    y = lax.conv_general_dilated(
        xp, w_conv, window_strides=(1,), padding=[(1, 1)],
        dimension_numbers=("NCH", "OIH", "NCH"))
    y = jnp.maximum(y + b_conv[None, :, None], 0.0)        # relu(conv1(x))
    L_out = y.shape[2]
    L_pool = L_out // pool_size
    y = y[:, :, :L_pool * pool_size].reshape(B, C_out, L_pool, pool_size).max(-1)
    feat = y.reshape(B, -1)                                # x.view(B, -1)
    logits = feat @ w_fc.T + b_fc                          # fc
    return jax.nn.sigmoid(logits)                          # sigmoid


if __name__ == "__main__":
    # Module-consistent small shapes: n_timesteps (waves) = 8, input_dim = 4 features;
    # batch chosen to exercise two lane-dense batch tiles plus ragged padding.
    B, T, F = 384, 8, 4
    num_channels, kernel_size, pool_size = 8, 3, 2
    L_out = (T - kernel_size + 2 * 1) // 1 + 1
    L_pool = L_out // pool_size
    feature_dim = num_channels * L_pool        # == CNNModel.feature_dim

    key = jax.random.PRNGKey(0)
    kx, kw, kb, kfw, kfb = jax.random.split(key, 5)
    x = jax.random.normal(kx, (B, T, F), jnp.float32)
    w_conv = 0.1 * jax.random.normal(kw, (num_channels, F, kernel_size), jnp.float32)
    b_conv = 0.1 * jax.random.normal(kb, (num_channels,), jnp.float32)
    w_fc = 0.1 * jax.random.normal(kfw, (1, feature_dim), jnp.float32)
    b_fc = 0.1 * jax.random.normal(kfb, (1,), jnp.float32)

    out = cnn_forward(x, w_conv, b_conv, w_fc, b_fc,
                      kernel_size=kernel_size, pool_size=pool_size, block_b=256)
    out = jax.block_until_ready(out)

    ref = reference_forward(x, w_conv, b_conv, w_fc, b_fc,
                            kernel_size=kernel_size, pool_size=pool_size)
    assert out.shape == (B, 1), out.shape
    assert jnp.allclose(out, ref, atol=1e-5, rtol=1e-5), (out, ref)
    print("KERNEL_OK")
</pallas_src>

<mosaic_0001>
module attributes {stable_mosaic.version = 11 : i64} {
  func.func @cnn_kernel(%arg0: i32, %arg1: memref<40x256xf32, #tpu.memory_space<vmem>>, %arg2: memref<8x12xf32, #tpu.memory_space<vmem>>, %arg3: memref<8x1xf32, #tpu.memory_space<vmem>>, %arg4: memref<1x32xf32, #tpu.memory_space<vmem>>, %arg5: memref<1x1xf32, #tpu.memory_space<smem>>, %arg6: memref<1x256xf32, #tpu.memory_space<vmem>>) attributes {dimension_semantics = [#tpu.dimension_semantics<parallel>], iteration_bounds = array<i64: 2>, scalar_prefetch = 0 : i64, scratch_operands = 0 : i64, tpu.core_type = #tpu.core_type<tc>, window_params = [{transform_indices = @transform_0, window_bounds = array<i64: 40, 256>}, {pipeline_mode = #tpu.pipeline_mode<synchronous>, transform_indices = @transform_1, window_bounds = array<i64: 8, 12>}, {pipeline_mode = #tpu.pipeline_mode<synchronous>, transform_indices = @transform_2, window_bounds = array<i64: 8, 1>}, {pipeline_mode = #tpu.pipeline_mode<synchronous>, transform_indices = @transform_3, window_bounds = array<i64: 1, 32>}, {transform_indices = @transform_4, window_bounds = array<i64: 1, 1>}, {transform_indices = @transform_5, window_bounds = array<i64: 1, 256>}]} {
    %c0 = arith.constant 0 : index
    %c0_0 = arith.constant 0 : index
    %0 = vector.load %arg2[%c0, %c0_0] : memref<8x12xf32, #tpu.memory_space<vmem>>, vector<8x12xf32>
    %c0_1 = arith.constant 0 : index
    %c0_2 = arith.constant 0 : index
    %1 = vector.load %arg3[%c0_1, %c0_2] : memref<8x1xf32, #tpu.memory_space<vmem>>, vector<8x1xf32>
    %2 = vector.shape_cast %1 : vector<8x1xf32> to vector<8x1xf32>
    %3 = vector.broadcast %2 : vector<8x1xf32> to vector<8x256xf32>
    %c0_3 = arith.constant 0 : index
    %c0_4 = arith.constant 0 : index
    %4 = vector.load %arg1[%c0_3, %c0_4] : memref<40x256xf32, #tpu.memory_space<vmem>>, vector<12x256xf32>
    %cst = arith.constant dense<0.000000e+00> : vector<8x256xf32>
    %5 = tpu.matmul %0, %4, %cst {dimension_numbers = #tpu.dot_dimension_numbers<[1], [0], [0], [1], [0, 0, 1, 1], [], []>} : vector<8x12xf32>, vector<12x256xf32>, vector<8x256xf32> -> vector<8x256xf32>
    %6 = arith.addf %5, %3 : vector<8x256xf32>
    %cst_5 = arith.constant 0.000000e+00 : f32
    %7 = vector.broadcast %cst_5 : f32 to vector<8x256xf32>
    %8 = arith.maximumf %6, %7 : vector<8x256xf32>
    %c4 = arith.constant 4 : index
    %c0_6 = arith.constant 0 : index
    %9 = vector.load %arg1[%c4, %c0_6] : memref<40x256xf32, #tpu.memory_space<vmem>>, vector<12x256xf32>
    %cst_7 = arith.constant dense<0.000000e+00> : vector<8x256xf32>
    %10 = tpu.matmul %0, %9, %cst_7 {dimension_numbers = #tpu.dot_dimension_numbers<[1], [0], [0], [1], [0, 0, 1, 1], [], []>} : vector<8x12xf32>, vector<12x256xf32>, vector<8x256xf32> -> vector<8x256xf32>
    %11 = arith.addf %10, %3 : vector<8x256xf32>
    %cst_8 = arith.constant 0.000000e+00 : f32
    %12 = vector.broadcast %cst_8 : f32 to vector<8x256xf32>
    %13 = arith.maximumf %11, %12 : vector<8x256xf32>
    %14 = arith.maximumf %8, %13 : vector<8x256xf32>
    %c8 = arith.constant 8 : index
    %c0_9 = arith.constant 0 : index
    %15 = vector.load %arg1[%c8, %c0_9] : memref<40x256xf32, #tpu.memory_space<vmem>>, vector<12x256xf32>
    %cst_10 = arith.constant dense<0.000000e+00> : vector<8x256xf32>
    %16 = tpu.matmul %0, %15, %cst_10 {dimension_numbers = #tpu.dot_dimension_numbers<[1], [0], [0], [1], [0, 0, 1, 1], [], []>} : vector<8x12xf32>, vector<12x256xf32>, vector<8x256xf32> -> vector<8x256xf32>
    %17 = arith.addf %16, %3 : vector<8x256xf32>
    %cst_11 = arith.constant 0.000000e+00 : f32
    %18 = vector.broadcast %cst_11 : f32 to vector<8x256xf32>
    %19 = arith.maximumf %17, %18 : vector<8x256xf32>
    %c12 = arith.constant 12 : index
    %c0_12 = arith.constant 0 : index
    %20 = vector.load %arg1[%c12, %c0_12] : memref<40x256xf32, #tpu.memory_space<vmem>>, vector<12x256xf32>
    %cst_13 = arith.constant dense<0.000000e+00> : vector<8x256xf32>
    %21 = tpu.matmul %0, %20, %cst_13 {dimension_numbers = #tpu.dot_dimension_numbers<[1], [0], [0], [1], [0, 0, 1, 1], [], []>} : vector<8x12xf32>, vector<12x256xf32>, vector<8x256xf32> -> vector<8x256xf32>
    %22 = arith.addf %21, %3 : vector<8x256xf32>
    %cst_14 = arith.constant 0.000000e+00 : f32
    %23 = vector.broadcast %cst_14 : f32 to vector<8x256xf32>
    %24 = arith.maximumf %22, %23 : vector<8x256xf32>
    %25 = arith.maximumf %19, %24 : vector<8x256xf32>
    %c16 = arith.constant 16 : index
    %c0_15 = arith.constant 0 : index
    %26 = vector.load %arg1[%c16, %c0_15] : memref<40x256xf32, #tpu.memory_space<vmem>>, vector<12x256xf32>
    %cst_16 = arith.constant dense<0.000000e+00> : vector<8x256xf32>
    %27 = tpu.matmul %0, %26, %cst_16 {dimension_numbers = #tpu.dot_dimension_numbers<[1], [0], [0], [1], [0, 0, 1, 1], [], []>} : vector<8x12xf32>, vector<12x256xf32>, vector<8x256xf32> -> vector<8x256xf32>
    %28 = arith.addf %27, %3 : vector<8x256xf32>
    %cst_17 = arith.constant 0.000000e+00 : f32
    %29 = vector.broadcast %cst_17 : f32 to vector<8x256xf32>
    %30 = arith.maximumf %28, %29 : vector<8x256xf32>
    %c20 = arith.constant 20 : index
    %c0_18 = arith.constant 0 : index
    %31 = vector.load %arg1[%c20, %c0_18] : memref<40x256xf32, #tpu.memory_space<vmem>>, vector<12x256xf32>
    %cst_19 = arith.constant dense<0.000000e+00> : vector<8x256xf32>
    %32 = tpu.matmul %0, %31, %cst_19 {dimension_numbers = #tpu.dot_dimension_numbers<[1], [0], [0], [1], [0, 0, 1, 1], [], []>} : vector<8x12xf32>, vector<12x256xf32>, vector<8x256xf32> -> vector<8x256xf32>
    %33 = arith.addf %32, %3 : vector<8x256xf32>
    %cst_20 = arith.constant 0.000000e+00 : f32
    %34 = vector.broadcast %cst_20 : f32 to vector<8x256xf32>
    %35 = arith.maximumf %33, %34 : vector<8x256xf32>
    %36 = arith.maximumf %30, %35 : vector<8x256xf32>
    %c24 = arith.constant 24 : index
    %c0_21 = arith.constant 0 : index
    %37 = vector.load %arg1[%c24, %c0_21] : memref<40x256xf32, #tpu.memory_space<vmem>>, vector<12x256xf32>
    %cst_22 = arith.constant dense<0.000000e+00> : vector<8x256xf32>
    %38 = tpu.matmul %0, %37, %cst_22 {dimension_numbers = #tpu.dot_dimension_numbers<[1], [0], [0], [1], [0, 0, 1, 1], [], []>} : vector<8x12xf32>, vector<12x256xf32>, vector<8x256xf32> -> vector<8x256xf32>
    %39 = arith.addf %38, %3 : vector<8x256xf32>
    %cst_23 = arith.constant 0.000000e+00 : f32
    %40 = vector.broadcast %cst_23 : f32 to vector<8x256xf32>
    %41 = arith.maximumf %39, %40 : vector<8x256xf32>
    %c28 = arith.constant 28 : index
    %c0_24 = arith.constant 0 : index
    %42 = vector.load %arg1[%c28, %c0_24] : memref<40x256xf32, #tpu.memory_space<vmem>>, vector<12x256xf32>
    %cst_25 = arith.constant dense<0.000000e+00> : vector<8x256xf32>
    %43 = tpu.matmul %0, %42, %cst_25 {dimension_numbers = #tpu.dot_dimension_numbers<[1], [0], [0], [1], [0, 0, 1, 1], [], []>} : vector<8x12xf32>, vector<12x256xf32>, vector<8x256xf32> -> vector<8x256xf32>
    %44 = arith.addf %43, %3 : vector<8x256xf32>
    %cst_26 = arith.constant 0.000000e+00 : f32
    %45 = vector.broadcast %cst_26 : f32 to vector<8x256xf32>
    %46 = arith.maximumf %44, %45 : vector<8x256xf32>
    %47 = arith.maximumf %41, %46 : vector<8x256xf32>
    %48 = tpu.concatenate %14, %25, %36, %47 in 0 : vector<8x256xf32>, vector<8x256xf32>, vector<8x256xf32>, vector<8x256xf32> -> vector<32x256xf32>
    %c0_27 = arith.constant 0 : index
    %c0_28 = arith.constant 0 : index
    %49 = vector.load %arg4[%c0_27, %c0_28] : memref<1x32xf32, #tpu.memory_space<vmem>>, vector<1x32xf32>
    %cst_29 = arith.constant dense<0.000000e+00> : vector<1x256xf32>
    %50 = tpu.matmul %49, %48, %cst_29 {dimension_numbers = #tpu.dot_dimension_numbers<[1], [0], [0], [1], [0, 0, 1, 1], [], []>} : vector<1x32xf32>, vector<32x256xf32>, vector<1x256xf32> -> vector<1x256xf32>
    %c0_30 = arith.constant 0 : index
    %c0_31 = arith.constant 0 : index
    %51 = memref.load %arg5[%c0_30, %c0_31] : memref<1x1xf32, #tpu.memory_space<smem>>
    %52 = vector.broadcast %51 : f32 to vector<1x256xf32>
    %53 = arith.addf %50, %52 : vector<1x256xf32>
    %cst_32 = arith.constant 0.000000e+00 : f32
    %54 = vector.broadcast %cst_32 : f32 to vector<1x256xf32>
    %55 = arith.subf %54, %53 : vector<1x256xf32>
    %56 = math.exp %55 : vector<1x256xf32>
    %cst_33 = arith.constant 1.000000e+00 : f32
    %57 = vector.broadcast %cst_33 : f32 to vector<1x256xf32>
    %58 = arith.addf %57, %56 : vector<1x256xf32>
    %cst_34 = arith.constant 1.000000e+00 : f32
    %59 = vector.broadcast %cst_34 : f32 to vector<1x256xf32>
    %60 = arith.divf %59, %58 : vector<1x256xf32>
    %c0_35 = arith.constant 0 : index
    %c0_36 = arith.constant 0 : index
    %61 = vector.load %arg6[%c0_35, %c0_36] : memref<1x256xf32, #tpu.memory_space<vmem>>, vector<1x256xf32>
    tpu.vector_store %arg6[%c0_35, %c0_36], %60 {strides = array<i32>} : memref<1x256xf32, #tpu.memory_space<vmem>>, vector<1x256xf32>,
    return
  }
  func.func @transform_0(%arg0: i32) -> (i32, i32) {
    %c0_i32 = arith.constant 0 : i32
    %c0_i32_0 = arith.constant 0 : i32
    return %c0_i32, %arg0 : i32, i32
  }
  func.func @transform_1(%arg0: i32) -> (i32, i32) {
    %c0_i32 = arith.constant 0 : i32
    %c0_i32_0 = arith.constant 0 : i32
    %c0_i32_1 = arith.constant 0 : i32
    return %c0_i32, %c0_i32_0 : i32, i32
  }
  func.func @transform_2(%arg0: i32) -> (i32, i32) {
    %c0_i32 = arith.constant 0 : i32
    %c0_i32_0 = arith.constant 0 : i32
    %c0_i32_1 = arith.constant 0 : i32
    return %c0_i32, %c0_i32_0 : i32, i32
  }
  func.func @transform_3(%arg0: i32) -> (i32, i32) {
    %c0_i32 = arith.constant 0 : i32
    %c0_i32_0 = arith.constant 0 : i32
    %c0_i32_1 = arith.constant 0 : i32
    return %c0_i32, %c0_i32_0 : i32, i32
  }
  func.func @transform_4(%arg0: i32) -> (i32, i32) {
    %c0_i32 = arith.constant 0 : i32
    %c0_i32_0 = arith.constant 0 : i32
    %c0_i32_1 = arith.constant 0 : i32
    return %c0_i32, %c0_i32_0 : i32, i32
  }
  func.func @transform_5(%arg0: i32) -> (i32, i32) {
    %c0_i32 = arith.constant 0 : i32
    %c0_i32_0 = arith.constant 0 : i32
    return %c0_i32, %arg0 : i32, i32
  }
}

</mosaic_0001>

<bundles_post_ra>
// kernel: tpu_custom_call.1
= control target key start
LH: loop header
LB: loop body
LE: loop exit
PB: predicated region body
PF: predicated region fallthrough
CT: control target
= control target key end

     0   :  { %s1733_s0 = inlined_call_operand.hbm [shape: f32[40,512], index: 0, kind: input, shape index: {}]   ;;  %s1734_s1 = inlined_call_operand.vmem [shape: f32[8,12], index: 1, kind: input, shape index: {}]   ;;  %s1735_s2 = inlined_call_operand.vmem [shape: f32[8,1], index: 2, kind: input, shape index: {}]   ;;  %s1736_s3 = inlined_call_operand.vmem [shape: f32[1,32], index: 3, kind: input, shape index: {}]   ;;  %s1737_s4 = inlined_call_operand.<no memory space> [shape: f32[1,1], index: 4, kind: input, shape index: {}]   ;;  %s1738_s5 = inlined_call_operand.hbm [shape: f32[1,512], index: 5, kind: output, shape index: {}]  }
   0x1   :  { %10 = sst [smem:[#allocation2]] %s1737_s4 }
   0x2   :  { %11 = vsyncpa [#allocation4], 0 }
   0x3   :  { %13 = vsyncpa [#allocation4 + $0x1], 0 }
   0x4   :  { %14 = vsyncpa [#allocation5], 0 }
   0x5   :  { %16 = vsyncpa [#allocation5 + $0x1], 0  ;;  %s1467_s20 = smov 0   ;;  %s1469_s21 = smov 0  }
   0x6   :  { %s1471_s22 = smov 0   ;;  %s1473_s23 = smov 0  }
   0x7 LB: > { %s1488_s4 = sadd.s32 4294967295, %s1423_s23   ;;  %s1168_s24 = sadd.s32 4294967294, %s1423_s23   ;;  %s1423_s23 = sphi %s1473_s23, %s1753_s23   ;;  %s1419_s22 = sphi %s1471_s22, %s1752_s22   ;;  %s1415_s21 = sphi %s1469_s21, %s1751_s21   ;;  %s1411_s20 = sphi %s1467_s20, %s1750_s20  }
   0x8   : > { %s1492_s25 = sadd.s32 1, %s1423_s23   ;;  %s29_s26 = sadd.s32 1, %s1419_s22 }
   0x9   : > { %s26_s27 = ssub.s32 %s1423_s23, %s1492_s25  ;;  %p36_p0 = scmp.ne.s32.totalorder %s1419_s22, %s1415_s21 }
   0xa   : > { %p27_p1 = scmp.eq.s32.totalorder %s26_s27, 0  ;;  %p37_p2 = scmp.eq.s32.totalorder %s1423_s23, 0 }
   0xb   : > { %p42_p3 = scmp.ne.s32.totalorder %s1415_s21, %s1411_s20  ;;  %p43_p4 = scmp.eq.s32.totalorder %s1488_s4, 0 }
   0xc   : > { %s1504_s28 = scalar_select %p27_p1, %s1419_s22, %s29_s26  }
   0xd   : > { %p38_p5 = por %p37_p2, %p36_p0  ;;  %p1506_p6 = por %p43_p4, %p42_p3 }
   0xe   : > { %p150_p7 = scmp.eq.s32.totalorder %s1488_s4, 1  ;;  %p156_p8 = scmp.eq.s32.totalorder %s1168_s24, 1 }
   0xf   : > { %p1277_p10 = scmp.lt.s32.totalorder %s1423_s23, 2  ;;  %s188_s7 = sand.u32 1, %s1419_s22  }
  0x10   : > { %p1513_p11 = por %p150_p7, %p36_p0  ;;  %p1517_p12 = por %p156_p8, %p42_p3 }
  0x11   : > { %s1205_s8 = sshll.u32 %s1423_s23, 8  ;;  %s1263_s9 = smul.u32 80, %s188_s7 }
  0x12   : > { %s1741_s30 = scalar_select %p1513_p11, 1, 0 }
  0x13   : > { %s1742_s6 = scalar_select %p1517_p12, 1, 0 }
  0x14   : > { %s1526_s12 = scalar_lea.hbm %s1733_s0, %s1205_s8  ;;  %p1528_p13 = pnand %p1277_p10, %p38_p5 }
  0x15   : > { %s192_s14 = scalar_lea.vmem [#allocation3], %s1263_s9  ;;  %s1535_s16 = scalar_lea.sflag [#allocation4], %s188_s7 }
  0x16   : > { %s199_s15 = sshll.u32 %s192_s14, 4  ;;  %s1327_s17 = scalar_lea.hbm %s1526_s12, 1280  ;;  %s1532_s15 = int_to_ptr.vmem [resolvable:$true] %s199_s15 }
  0x17   : > { %p1328_p1 = scmp.ne.s32.totalorder %s1526_s12, %s1327_s17  ;;  %p1329_p2 = pneg %p1528_p13 }
  0x18   : > { %s1332_s24 = scalar_lea.hbm %s1733_s0, 2560  ;;  %p1333_p5 = scmp.lt.u32.totalorder %s1526_s12, %s1733_s0 }
  0x19   : > { %p1330_p3 = pnand %p1329_p2, %p1328_p1  ;;  %p1334_p7 = scmp.lt.u32.totalorder %s1332_s24, %s1327_s17 }
  0x1a   : > { %p1336_p10 = scmp.lt.u32.totalorder %s1327_s17, %s1526_s12 }
  0x1b   : > { %p1331_p4 = pneg %p1330_p3  ;;  %p1335_p8 = por %p1334_p7, %p1333_p5 }
  0x1d   : > { %p1337_p9 = por %p1336_p10, %p1335_p8 }
  0x1f   : > { %p1338_p0 = pnand %p1337_p9, %p1331_p4 }
  0x21   : > { %1341 = shalt.err (!%p1338_p0)
}
  0x22   : > { %s1342_s7 = scalar_lea.vmem %s1532_s15, 1280  ;;  %s1425_s8 = smov [#allocation3]  }
  0x23   : > { %p1343_p1 = scmp.ne.s32.totalorder %s1532_s15, %s1342_s7  ;;  %s1347_s9 = sshll.u32 %s1425_s8, 4  ;;  %s1348_s9 = int_to_ptr.vmem [resolvable:$false] %s1347_s9 }
  0x24   : > { %s1349_s10 = scalar_lea.vmem %s1348_s9, 2560  ;;  %p1350_p11 = scmp.lt.s32.totalorder %s1532_s15, %s1348_s9 }
  0x25   : > { %p1345_p3 = pnand %p1343_p1, %p1329_p2  ;;  %p1351_p5 = scmp.lt.s32.totalorder %s1349_s10, %s1342_s7 }
  0x27   : > { %p1346_p12 = pneg %p1345_p3  ;;  %p1352_p7 = por %p1351_p5, %p1350_p11 }
  0x29   : > { %p1353_p8 = pnand %p1352_p7, %p1346_p12 }
  0x2b   : > { %1356 = shalt.err (!%p1353_p8)
}
  0x2c   : > { %s1426_s11 = smov 512   ;;  %s1427_s14 = smov 256  }
  0x2d   : > { %s1428_s17 = smov 16   ;;  %p207_p9 = scmp.lt.s32.totalorder %s1423_s23, 3 }
  0x2e   : > { %1272 = dma.hbm_to_vmem [thread:$0]  (!%p1528_p13), %s1526_s12, 1280, %s1532_s15, %s1535_s16, %s1426_s11, %s1427_s14, %s1428_s17  }
  0x2f   : > { %p1744_p0 = scmp.ge.s32.totalorder %s1423_s23, 1 }
  0x31   : > { %p208_p2 = pnand %p1744_p0, %p207_p9 }
  0x32   : > { %s1567_s18 = sand.u32 (!%p208_p2), 1, %s1415_s21  }
  0x33   : > { %211 = sbr.rel (%p208_p2) target bundleno = 572 (0x23c), region = 40  ;;  %s214_s24 = scalar_lea.sflag (!%p208_p2), [#allocation4], %s1567_s18 }
  0x34   : > { %s1264_s19 = smul.u32 (!%p208_p2), 80, %s1567_s18 }
  0x36   : > { %s1571_s26 = scalar_lea.vmem (!%p208_p2), [#allocation3], %s1264_s19 }
  0x3a   : > { %1402 = dma.done.wait (%p1506_p6), %s214_s24, 1280  }
  0x3b   : > { %1404 = vsyncadd (%p1506_p6), %s214_s24, 4294966016  ;;  %v1429_v0 = vmov 0.0   ;;  %v1430_v1 = vmov 0   ;;  %vm261_vm0 = vcmask 1043456   ;;  %vm1431_vm1 = vmmov 1   ;;  %v254_v3 = vld [vmem:[%s1571_s26 + $0x8] sm:$0xff] }
  0x3c   : > { %332 = vmatprep.mubr.f32.mxu1 %v1429_v0  ;;  %510 = vmatprep.mubr.f32.mxu0 %v1429_v0  ;;  %vm1580_vm2 = vmpackc.low %vm261_vm0, %vm1431_vm1  ;;  %v256_v4 = vld [vmem:[%s1571_s26 + $0x18] sm:$0xf]  ;;  %v253_v5 = vld [vmem:[%s1571_s26] sm:$0xff]  ;;  %vm257_vm3 = vcmask 97280   ;;  %vm973_vm4 = vcmask 261120   ;;  %s971_s7 = sld [smem:[#allocation2]] }
  0x3d   : > { %1318 = vset.pattern.permute.xlu0 %v1430_v1  ;;  %v1207_v6 = vpack.c.bf16 %v256_v4, %v254_v3  ;;  %v255_v7 = vld [vmem:[%s1571_s26 + $0x10] sm:$0xf]  ;;  %v342_v8 = vld [vmem:[%s1571_s26 + $0x8] sm:$0xf0]  ;;  %v344_v11 = vld [vmem:[%s1571_s26 + $0x18] sm:$0xff]  ;;  %s1174_s8 = sshll.u32 %s1567_s18, 1 }
  0x3e   : > { %v1210_v9 = vpack.c.bf16 %v255_v7, %v253_v5  ;;  %v1592_v10 = vld [vmem:[%s1734_s1] sm:$0xff]  ;;  %v352_v12 = vrot.slane %v342_v8, 4  ;;  %v353_v15 = vrot.slane %v344_v11, 4  ;;  %v439_v18 = vld [vmem:[%s1571_s26 + $0x28] sm:$0xf]  ;;  %v700_v31 = vld [vmem:[%s1571_s26 + $0x38] sm:$0xff] }
  0x3f   : > { %v341_v13 = vld [vmem:[%s1571_s26] sm:$0xf0]  ;;  %v343_v14 = vld [vmem:[%s1571_s26 + $0x10] sm:$0xff]  ;;  %1209 = vmatprep.subr.msk.bf16.mxu1 %vm1580_vm2, %v1207_v6  ;;  %v522_v19 = vld [vmem:[%s1571_s26 + $0x28] sm:$0xff]  ;;  %v1219_v20 = vpack.c.bf16 %v439_v18, %v344_v11  ;;  %v709_v47 = vrot.slane %v700_v31, 4  ;;  %s1206_s9 = sshll.u32 %s1488_s4, 5 }
  0x40   : > { %v349_v16 = vrot.slane %v341_v13, 4  ;;  %v350_v17 = vrot.slane %v343_v14, 4  ;;  %1212 = vmatpush1.bf16.msk.msra.mxu1 %vm1580_vm2, %v1210_v9  ;;  %v438_v21 = vld [vmem:[%s1571_s26 + $0x20] sm:$0xf]  ;;  %v520_v22 = vld [vmem:[%s1571_s26 + $0x18] sm:$0xf0]  ;;  %v354_v25 = vsel %vm261_vm0, %v352_v12, %v353_v15  ;;  %s1689_s19 = scalar_lea.hbm %s1738_s5, %s1206_s9 }
  0x41   : > { %v531_v23 = vrot.slane %v522_v19, 4  ;;  %v521_v24 = vld [vmem:[%s1571_s26 + $0x20] sm:$0xff]  ;;  %v1222_v27 = vpack.c.bf16 %v438_v21, %v343_v14  ;;  %v530_v28 = vrot.slane %v520_v22, 4  ;;  %v519_v29 = vld [vmem:[%s1571_s26 + $0x10] sm:$0xf0]  ;;  %v1213_v32 = vpack.c.bf16 %v353_v15, %v354_v25  ;;  %1221 = vmatprep.subr.msk.bf16.mxu0 %vm1580_vm2, %v1219_v20  ;;  %v878_v54 = vld [vmem:[%s1571_s26 + $0x48] sm:$0xff] }
  0x42   : > { %v351_v26 = vsel %vm261_vm0, %v349_v16, %v350_v17  ;;  %v617_v30 = vld [vmem:[%s1571_s26 + $0x38] sm:$0xf]  ;;  %v527_v34 = vrot.slane %v519_v29, 4  ;;  %v528_v35 = vrot.slane %v521_v24, 4  ;;  %v616_v36 = vld [vmem:[%s1571_s26 + $0x30] sm:$0xf] }
  0x43   : > { %v1216_v33 = vpack.c.bf16 %v350_v17, %v351_v26  ;;  %v698_v37 = vld [vmem:[%s1571_s26 + $0x28] sm:$0xf0]  ;;  %1177 = vmatmul.mubr.msk.f32.vlgmr.msra.gmra.mrb[0].mxu1 %vm257_vm3, %v1592_v10  ;;  %1224 = vmatpush1.bf16.msk.msra.mxu0 %vm1580_vm2, %v1222_v27  ;;  %v532_v38 = vsel %vm261_vm0, %v530_v28, %v531_v23  ;;  %v1231_v39 = vpack.c.bf16 %v617_v30, %v522_v19  ;;  %v697_v42 = vld [vmem:[%s1571_s26 + $0x20] sm:$0xf0]  ;;  %v699_v43 = vld [vmem:[%s1571_s26 + $0x30] sm:$0xff]  ;;  %v887_v59 = vrot.slane %v878_v54, 4 }
  0x44   : > { %v1234_v40 = vpack.c.bf16 %v616_v36, %v521_v24  ;;  %v708_v41 = vrot.slane %v698_v37, 4  ;;  %v795_v44 = vld [vmem:[%s1571_s26 + $0x48] sm:$0xf]  ;;  %1215 = vmatprep.subr.msk.bf16.mxu1 %vm1580_vm2, %v1213_v32  ;;  %425 = vmatprep.mubr.f32.mxu1 %v1429_v0  ;;  %v1225_v45 = vpack.c.bf16 %v531_v23, %v532_v38  ;;  %v529_v46 = vsel %vm261_vm0, %v527_v34, %v528_v35  ;;  %v794_v49 = vld [vmem:[%s1571_s26 + $0x40] sm:$0xf]  ;;  %s243_s10 = scalar_lea.vmem [#allocation6], %s1174_s8 }
  0x45   : > { %v705_v48 = vrot.slane %v697_v42, 4  ;;  %v876_v50 = vld [vmem:[%s1571_s26 + $0x38] sm:$0xf0]  ;;  %1218 = vmatpush1.bf16.msk.msra.mxu1 %vm1580_vm2, %v1216_v33  ;;  %v1228_v51 = vpack.c.bf16 %v528_v35, %v529_v46  ;;  %1233 = vmatprep.subr.msk.bf16.mxu0 %vm1580_vm2, %v1231_v39  ;;  %v706_v52 = vrot.slane %v699_v43, 4  ;;  %v1243_v53 = vpack.c.bf16 %v795_v44, %v700_v31  ;;  %v875_v55 = vld [vmem:[%s1571_s26 + $0x30] sm:$0xf0] }
  0x46   : > { %v877_v56 = vld [vmem:[%s1571_s26 + $0x40] sm:$0xff]  ;;  %1227 = vmatprep.subr.msk.bf16.mxu1 %vm1580_vm2, %v1225_v45  ;;  %1183 = vmatmul.mubr.msk.f32.vlgmr.msra.gmra.mrb[0].mxu0 %vm257_vm3, %v1592_v10  ;;  %v710_v57 = vsel %vm261_vm0, %v708_v41, %v709_v47  ;;  %v886_v58 = vrot.slane %v876_v50, 4  ;;  %v883_v60 = vrot.slane %v875_v55, 4  ;;  %v1246_v63 = vpack.c.bf16 %v794_v49, %v699_v43  ;;  %s1098_s11 = sshll.u32 %s243_s10, 4  ;;  %s1084_s24 = scalar_lea.sflag [#allocation5], %s1567_s18  ;;  %s1691_s11 = int_to_ptr.vmem [resolvable:$true] %s1098_s11 }
  0x47   : > { %1236 = vmatpush1.bf16.msk.msra.mxu0 %vm1580_vm2, %v1234_v40  ;;  %688 = vmatprep.mubr.f32.mxu0 %v1429_v0  ;;  %v1237_v61 = vpack.c.bf16 %v709_v47, %v710_v57  ;;  %v707_v62 = vsel %vm261_vm0, %v705_v48, %v706_v52  ;;  %v884_v1 = vrot.slane %v877_v56, 4  ;;  %v247_v5 = vld [vmem:[%s1735_s2] sm:$0xff]  ;;  %s1357_s26 = scalar_lea.vmem %s1691_s11, 32  ;;  %p1747_p11 = scmp.ne.s32.totalorder %s1741_s30, 0 }
  0x48   : > { %1180 = vmatmul.mubr.msk.f32.vlgmr.msra.gmra.mrb[2].mxu1 %vm257_vm3, %v1592_v10  ;;  %1245 = vmatprep.subr.msk.bf16.mxu0 %vm1580_vm2, %v1243_v53  ;;  %v888_v3 = vsel %vm261_vm0, %v886_v58, %v887_v59  ;;  %v1240_v4 = vpack.c.bf16 %v706_v52, %v707_v62  ;;  %p1358_p6 = scmp.ne.s32.totalorder %s1691_s11, %s1357_s26  ;;  %s1433_s4 = smov [#allocation6]  }
  0x49   : > { %1230 = vmatpush1.bf16.msk.msra.mxu1 %vm1580_vm2, %v1228_v51  ;;  %603 = vmatprep.mubr.f32.mxu1 %v1429_v0  ;;  %v1249_v6 = vpack.c.bf16 %v887_v59, %v888_v3  ;;  %v885_v7 = vsel %vm261_vm0, %v883_v60, %v884_v1  ;;  %s1361_s29 = sshll.u32 %s1433_s4, 4  ;;  %s1362_s29 = int_to_ptr.vmem [resolvable:$false] %s1361_s29 }
  0x4a   : > { %1239 = vmatprep.subr.msk.bf16.mxu1 %vm1580_vm2, %v1237_v61  ;;  %1189 = vmatmul.mubr.msk.f32.vlgmr.msra.gmra.mrb[2].mxu0 %vm257_vm3, %v1592_v10  ;;  %v1252_v8 = vpack.c.bf16 %v884_v1, %v885_v7  ;;  %v972_v7 = vstv %s971_s7  ;;  %p1359_p12 = pnand %p1358_p6, %p1747_p11  ;;  %s1363_s12 = scalar_lea.vmem %s1362_s29, 64 }
  0x4b   : > { %1248 = vmatpush1.bf16.msk.msra.mxu0 %vm1580_vm2, %v1246_v63  ;;  %866 = vmatprep.mubr.f32.mxu0 %v1429_v0  ;;  %p1364_p4 = scmp.lt.s32.totalorder %s1691_s11, %s1362_s29  ;;  %p1365_p10 = scmp.lt.s32.totalorder %s1363_s12, %s1357_s26 }
  0x4c   : > { %1186 = vmatmul.mubr.msk.f32.vlgmr.msra.gmra.mrb[4].mxu1 %vm257_vm3, %v1592_v10  ;;  %250 = vperm.xlu0 %1318, %v247_v5   ;;  %p1360_p13 = pneg %p1359_p12 }
  0x4d   : > { %1242 = vmatpush1.bf16.msk.msra.mxu1 %vm1580_vm2, %v1240_v4  ;;  %781 = vmatprep.mubr.f32.mxu1 %v1429_v0  ;;  %p1366_p1 = por %p1365_p10, %p1364_p4 }
  0x4e   : > { %1251 = vmatprep.subr.msk.bf16.mxu1 %vm1580_vm2, %v1249_v6  ;;  %1195 = vmatmul.mubr.msk.f32.vlgmr.msra.gmra.mrb[4].mxu0 %vm257_vm3, %v1592_v10  ;;  %v970_v6 = vld [vmem:[%s1736_s3] sm:$0x1] }
  0x4f   : > { %1041 = vmatprep.mubr.f32.mxu0 %v1429_v0  ;;  %p1367_p3 = pnand %p1366_p1, %p1360_p13 }
  0x50   : > { %1192 = vmatmul.mubr.msk.f32.vlgmr.msra.gmra.mrb[6].mxu1 %vm257_vm3, %v1592_v10 }
  0x51   : > { %1254 = vmatpush1.bf16.msk.msra.mxu1 %vm1580_vm2, %v1252_v8  ;;  %959 = vmatprep.mubr.f32.mxu1 %v1429_v0 }
  0x54   : > { %1198 = vmatmul.mubr.msk.f32.vlgmr.msra.gmra.mrb[8].mxu1 %vm257_vm3, %v1592_v10 }
  0xcb   : > { %v251_v11 = vpop.permute.xlu0 %250 }
 0x116   : > { %v334_v9 = vpop.f32.mrb[0].mxu1 }
 0x117   : > { %v336_v12 = vpop.f32.mrb[1].mxu1  ;;  %v335_v14 = vadd.f32 %v334_v9, %v251_v11 }
 0x118   : > { %v337_v16 = vadd.f32 %v336_v12, %v251_v11 }
 0x119   : > { %v512_v13 = vpop.f32.mrb[0].mxu0  ;;  %v339_v23 = vmax.f32 %v335_v14, 0.0 }
 0x11a   : > { %v514_v15 = vpop.f32.mrb[1].mxu0  ;;  %v513_v20 = vadd.f32 %v512_v13, %v251_v11  ;;  %v340_v25 = vmax.f32 %v337_v16, 0.0 }
 0x11b   : > { %v427_v17 = vpop.f32.mrb[2].mxu1  ;;  %v515_v22 = vadd.f32 %v514_v15, %v251_v11 }
 0x11c   : > { %v428_v18 = vadd.f32 %v427_v17, %v251_v11  ;;  %v429_v19 = vpop.f32.mrb[3].mxu1  ;;  %v517_v28 = vmax.f32 %v513_v20, 0.0 }
 0x11d   : > { %v430_v21 = vadd.f32 %v429_v19, %v251_v11  ;;  %v690_v2 = vpop.f32.mrb[2].mxu0  ;;  %v518_v33 = vmax.f32 %v515_v22, 0.0 }
 0x11e   : > { %v432_v24 = vmax.f32 %v428_v18, 0.0  ;;  %v692_v0 = vpop.f32.mrb[3].mxu0  ;;  %v691_v31 = vadd.f32 %v690_v2, %v251_v11  ;;  %v1066_v2 = vlaneseq }
 0x11f   : > { %v433_v26 = vmax.f32 %v430_v21, 0.0  ;;  %v605_v10 = vpop.f32.mrb[4].mxu1  ;;  %v693_v35 = vadd.f32 %v692_v0, %v251_v11  ;;  %v1432_v21 = vmov 1966171168  }
 0x120   : > { %v434_v27 = vmax.f32 %v339_v23, %v432_v24  ;;  %v606_v29 = vadd.f32 %v605_v10, %v251_v11  ;;  %v607_v30 = vpop.f32.mrb[5].mxu1  ;;  %v695_v42 = vmax.f32 %v691_v31, 0.0  ;;  %v1064_v22 = vunpack.c.l.s4 %v1432_v21 }
 0x121   : > { %v435_v32 = vmax.f32 %v340_v25, %v433_v26  ;;  %v608_v34 = vadd.f32 %v607_v30, %v251_v11  ;;  %v868_v36 = vpop.f32.mrb[4].mxu0  ;;  %v696_v46 = vmax.f32 %v693_v35, 0.0  ;;  %v1067_v24 = vshrl.u32 %v1066_v2, 7 }
 0x122   : > { %v610_v37 = vmax.f32 %v606_v29, 0.0  ;;  %v870_v38 = vpop.f32.mrb[5].mxu0  ;;  %v869_v50 = vadd.f32 %v868_v36, %v251_v11  ;;  %v1065_v23 = vunpack.c.0.s8 %v1064_v22  ;;  %vm1080_vm5 = vcmp.lt.s32.totalorder %v1066_v2, 256 }
 0x123   : > { %v611_v39 = vmax.f32 %v608_v34, 0.0  ;;  %v783_v40 = vpop.f32.mrb[6].mxu1  ;;  %v871_v52 = vadd.f32 %v870_v38, %v251_v11 }
 0x124   : > { %v612_v41 = vmax.f32 %v517_v28, %v610_v37  ;;  %v784_v43 = vadd.f32 %v783_v40, %v251_v11  ;;  %v785_v44 = vpop.f32.mrb[7].mxu1  ;;  %v873_v60 = vmax.f32 %v869_v50, 0.0  ;;  %v1068_v25 = vsub.s32 %v1065_v23, %v1067_v24 }
 0x125   : > { %v613_v45 = vmax.f32 %v518_v33, %v611_v39  ;;  %v786_v47 = vadd.f32 %v785_v44, %v251_v11  ;;  %v874_v62 = vmax.f32 %v871_v52, 0.0 }
 0x126   : > { %v1257_v48 = vpack.c.bf16 %v612_v41, %v434_v27  ;;  %v788_v49 = vmax.f32 %v784_v43, 0.0 }
 0x127   : > { %v789_v51 = vmax.f32 %v786_v47, 0.0  ;;  %v961_v53 = vpop.f32.mrb[8].mxu1  ;;  %v1255_v54 = vpack.c.bf16 %v613_v45, %v435_v32 }
 0x128   : > { %v790_v55 = vmax.f32 %v695_v42, %v788_v49  ;;  %v962_v56 = vadd.f32 %v961_v53, %v251_v11  ;;  %v963_v57 = vpop.f32.mrb[9].mxu1 }
 0x129   : > { %v791_v58 = vmax.f32 %v696_v46, %v789_v51  ;;  %v964_v59 = vadd.f32 %v963_v57, %v251_v11  ;;  %1256 = vmatprep.subr.bf16.mxu0 %v1255_v54 }
 0x12a   : > { %v966_v61 = vmax.f32 %v962_v56, 0.0  ;;  %1258 = vmatpush1.bf16.msra.mxu0 %v1257_v48 }
 0x12b   : > { %v967_v63 = vmax.f32 %v964_v59, 0.0 }
 0x12c   : > { %v968_v1 = vmax.f32 %v873_v60, %v966_v61 }
 0x12d   : > { %v969_v3 = vmax.f32 %v874_v62, %v967_v63 }
 0x12e   : > { %v1261_v4 = vpack.c.bf16 %v968_v1, %v790_v55 }
 0x12f   : > { %v1259_v5 = vpack.c.bf16 %v969_v3, %v791_v58 }
 0x131   : > { %1260 = vmatprep.subr.bf16.mxu0 %v1259_v5 }
 0x132   : > { %1262 = vmatpush1.bf16.msra.mxu0 %v1261_v4 }
 0x135   : > { %1199 = vmatmul.mubr.msk.f32.vlgmr.msra.gmra.mrb[6].mxu0 %vm973_vm4, %v970_v6 }
 0x208   : > { %v1043_v8 = vpop.f32.mrb[6].mxu0 }
 0x209   : > { %v1044_v9 = vadd.f32 %v1043_v8, %v972_v7  ;;  %v1045_v11 = vpop.f32.mrb[7].mxu0 }
 0x20a   : > { %v1046_v12 = vadd.f32 %v1045_v11, %v972_v7 }
 0x20b   : > { %v1048_v13 = vsub.f32 0.0, %v1044_v9 }
 0x20c   : > { %v1049_v14 = vsub.f32 0.0, %v1046_v12 }
 0x20d   : > { %v1050_v15 = vmul.f32 1.442695, %v1048_v13 }
 0x20e   : > { %v1052_v16 = vmul.f32 1.442695, %v1049_v14 }
 0x20f   : > { %1319 = vpow2.f32 %v1050_v15 }
 0x210   : > { %1321 = vpow2.f32 %v1052_v16 }
 0x219   : > { %v1320_v17 = vpop.eup %1319 }
 0x21a   : > { %v1322_v18 = vpop.eup %1321  ;;  %v1054_v19 = vadd.f32 1.0, %v1320_v17 }
 0x21b   : > { %v1055_v20 = vadd.f32 1.0, %v1322_v18 }
 0x21c   : > { %1323 = vrcp.f32 %v1054_v19 }
 0x21d   : > { %1325 = vrcp.f32 %v1055_v20 }
 0x226   : > { %v1324_v0 = vpop.eup %1323 }
 0x227   : > { %v1326_v26 = vpop.eup %1325 }
 0x228   : > { %v1062_v10 = vcombine.low %v1324_v0, %v1326_v26 }
 0x22a   : > { %v1069_v27 = vrot.slane %v1062_v10, %v1068_v25 }
 0x22c   : > { %v1076_v28 = vrot.slane %v1069_v27, %v1068_v25 }
 0x22e   : > { %1082 = vst.msk [vmem:[%s243_s10] sm:$0x3] %vm1080_vm5, %v1076_v28 }
 0x22f   : > { %1370 = shalt.err (!%p1367_p3)
}
 0x230   : > { %s1371_s18 = scalar_lea.hbm %s1689_s19, 32  ;;  %s1375_s16 = scalar_lea.hbm %s1738_s5, 64 }
 0x231   : > { %p1372_p5 = scmp.ne.s32.totalorder %s1689_s19, %s1371_s18  ;;  %p1376_p9 = scmp.lt.u32.totalorder %s1689_s19, %s1738_s5 }
 0x232   : > { %p1377_p0 = scmp.lt.u32.totalorder %s1375_s16, %s1371_s18  ;;  %p1379_p6 = scmp.lt.u32.totalorder %s1371_s18, %s1689_s19 }
 0x233   : > { %p1373_p7 = pnand %p1372_p5, %p1747_p11 }
 0x234   : > { %p1378_p2 = por %p1377_p0, %p1376_p9 }
 0x235   : > { %p1374_p8 = pneg %p1373_p7 }
 0x236   : > { %p1380_p12 = por %p1379_p6, %p1378_p2 }
 0x238   : > { %p1381_p13 = pnand %p1380_p12, %p1374_p8 }
 0x23a   : > { %1384 = shalt.err (!%p1381_p13)
}
 0x23b   : > { %1267 = dma.vmem_to_hbm [thread:$0]  (%p1747_p11), %s1691_s11, 32, %s1689_s19, %s1084_s24  }
 0x23c PF: > { %s1110_s8 = sand.u32 1, %s1411_s20   ;;  %p1748_p4 = scmp.ne.s32.totalorder %s1742_s6, 0 }
 0x23d   : > { %p1749_p10 = scmp.ge.s32.totalorder %s1423_s23, 2  ;;  %s1111_s9 = scalar_lea.sflag [#allocation5], %s1110_s8 }
 0x23f   : > { %p1274_p1 = pnand %p1749_p10, %p1748_p4 }
 0x241   : > { %1406 = dma.done.wait (!%p1274_p1), %s1111_s9, 32  }
 0x242   : > { %1408 = vsyncadd (!%p1274_p1), %s1111_s9, 4294967264  ;;  %p19_p3 = scmp.ge.s32.totalorder %s1492_s25, 4   ;;  %s1750_s20 = smov %s1415_s21 }
 0x243   : > { %s1751_s21 = smov %s1419_s22  ;;  %s1752_s22 = smov %s1504_s28 }
 0x244   : > { %s1753_s23 = smov %s1492_s25  ;;  %21 = sbr.rel (!%p19_p3) target bundleno = 7 (0x7), region = 85 }
 0x24b   :  { %1116 = vsyncpa [#allocation4], 1 }
 0x24c   :  { %1118 = vsyncpa [#allocation4 + $0x1], 1 }
 0x24d   :  { %1119 = vsyncpa [#allocation5], 1 }
 0x24e   :  { %1121 = vsyncpa [#allocation5 + $0x1], 1 }

</bundles_post_ra>
